<compile_context>
chip_gen: v6e
topology: v6e:2x2x1
jax: 0.10.0
libtpu: 0.0.40
codegen_flags: <defaults>
</compile_context>

<pallas_src>
import jax
import jax.numpy as jnp
from jax.experimental import pallas as pl
from jax.experimental.pallas import tpu as pltpu


def _bpr_block_kernel(pos_ref, neg_ref, out_ref):
    # One independent row-block per grid step.
    d = pos_ref[...].astype(jnp.float32) - neg_ref[...].astype(jnp.float32)
    # Stable log(sigmoid(d)) = min(d, 0) - log1p(exp(-|d|))
    logsig = jnp.minimum(d, 0.0) - jnp.log1p(jnp.exp(-jnp.abs(d)))
    # Per-block partial sum -> scalar in SMEM (one XLU reduce per large tile).
    out_ref[0, 0] = jnp.sum(logsig)


def bpr_loss(positive, negative, *, tile_bytes=2 * 1024 * 1024):
    assert positive.shape == negative.shape
    assert positive.ndim == 2, "expected (batch, num_items) score matrices"
    M, N = positive.shape

    # Row-block size: as many rows as fit in ~tile_bytes of f32 per input tile,
    # rounded to a multiple of 8 sublanes (min 8).  Full N maps to lanes.
    rows_fit = max(8, (tile_bytes // max(1, N * 4)) // 8 * 8)
    m_rounded = -(-M // 8) * 8
    tm = int(min(rows_fit, m_rounded))
    M_pad = -(-M // tm) * tm

    if M_pad != M:
        pad = M_pad - M
        # Padded rows contribute exactly 0: d = +1e4 -> log(sigmoid(d)) == 0.
        positive = jnp.pad(positive, ((0, pad), (0, 0)), constant_values=1e4)
        negative = jnp.pad(negative, ((0, pad), (0, 0)), constant_values=0.0)

    grid = (M_pad // tm,)

    partials = pl.pallas_call(
        _bpr_block_kernel,
        out_shape=jax.ShapeDtypeStruct((grid[0], 1), jnp.float32),
        grid_spec=pltpu.PrefetchScalarGridSpec(
            num_scalar_prefetch=0,
            grid=grid,
            in_specs=[
                pl.BlockSpec((tm, N), lambda i: (i, 0)),
                pl.BlockSpec((tm, N), lambda i: (i, 0)),
            ],
            out_specs=pl.BlockSpec(
                (1, 1), lambda i: (i, 0), memory_space=pltpu.SMEM
            ),
        ),
        compiler_params=pltpu.CompilerParams(
            # Row-blocks are fully independent -> shard across TensorCores.
            dimension_semantics=("parallel",),
        ),
    )(positive, negative)

    # Tiny final reduction + negation in plain JAX.
    return -jnp.sum(partials)


def bpr_loss_ref(positive, negative):
    d = positive.astype(jnp.float32) - negative.astype(jnp.float32)
    return -jnp.sum(jnp.log(jax.nn.sigmoid(d)))


if __name__ == "__main__":
    key = jax.random.PRNGKey(0)

    # Case 1: small tile-aligned shape (batch=16, items=256) -> single block.
    kp, kn = jax.random.split(key)
    pos = jax.random.normal(kp, (16, 256), dtype=jnp.float32)
    neg = jax.random.normal(kn, (16, 256), dtype=jnp.float32)
    loss = jax.block_until_ready(bpr_loss(pos, neg))
    ref = bpr_loss_ref(pos, neg)
    assert jnp.allclose(loss, ref, rtol=1e-5, atol=1e-4), (loss, ref)

    # Case 2: non-tile-aligned shape (13, 200) -> exercises zero-contribution
    # row padding and a full-extent (non-128-multiple) lane dimension.
    kp2, kn2 = jax.random.split(jax.random.PRNGKey(1))
    pos2 = jax.random.normal(kp2, (13, 200), dtype=jnp.float32)
    neg2 = jax.random.normal(kn2, (13, 200), dtype=jnp.float32)
    loss2 = jax.block_until_ready(bpr_loss(pos2, neg2))
    ref2 = bpr_loss_ref(pos2, neg2)
    assert jnp.allclose(loss2, ref2, rtol=1e-5, atol=1e-4), (loss2, ref2)

    # Case 3: force multiple independent row-blocks (parallel grid path).
    kp3, kn3 = jax.random.split(jax.random.PRNGKey(2))
    pos3 = jax.random.normal(kp3, (48, 256), dtype=jnp.float32)
    neg3 = jax.random.normal(kn3, (48, 256), dtype=jnp.float32)
    loss3 = jax.block_until_ready(bpr_loss(pos3, neg3, tile_bytes=8 * 256 * 4))
    ref3 = bpr_loss_ref(pos3, neg3)
    assert jnp.allclose(loss3, ref3, rtol=1e-5, atol=1e-4), (loss3, ref3)

    print("KERNEL_OK")
</pallas_src>

<mosaic_0001>
module attributes {stable_mosaic.version = 11 : i64} {
  func.func @_bpr_block_kernel(%arg0: i32, %arg1: memref<16x256xf32, #tpu.memory_space<vmem>>, %arg2: memref<16x256xf32, #tpu.memory_space<vmem>>, %arg3: memref<1x1xf32, #tpu.memory_space<smem>>) attributes {dimension_semantics = [#tpu.dimension_semantics<parallel>], iteration_bounds = array<i64: 1>, scalar_prefetch = 0 : i64, scratch_operands = 0 : i64, tpu.core_type = #tpu.core_type<tc>, window_params = [{transform_indices = @transform_0, window_bounds = array<i64: 16, 256>}, {transform_indices = @transform_1, window_bounds = array<i64: 16, 256>}, {transform_indices = @transform_2, window_bounds = array<i64: 1, 1>}]} {
    %c0 = arith.constant 0 : index
    %c0_0 = arith.constant 0 : index
    %0 = vector.load %arg1[%c0, %c0_0] : memref<16x256xf32, #tpu.memory_space<vmem>>, vector<16x256xf32>
    %c0_1 = arith.constant 0 : index
    %c0_2 = arith.constant 0 : index
    %1 = vector.load %arg2[%c0_1, %c0_2] : memref<16x256xf32, #tpu.memory_space<vmem>>, vector<16x256xf32>
    %2 = arith.subf %0, %1 : vector<16x256xf32>
    %cst = arith.constant 0.000000e+00 : f32
    %3 = vector.broadcast %cst : f32 to vector<16x256xf32>
    %4 = arith.minimumf %2, %3 : vector<16x256xf32>
    %5 = math.absf %2 : vector<16x256xf32>
    %cst_3 = arith.constant 0.000000e+00 : f32
    %6 = vector.broadcast %cst_3 : f32 to vector<16x256xf32>
    %7 = arith.subf %6, %5 : vector<16x256xf32>
    %8 = math.exp %7 : vector<16x256xf32>
    %9 = math.log1p %8 : vector<16x256xf32>
    %10 = arith.subf %4, %9 : vector<16x256xf32>
    %11 = vector.shape_cast %10 : vector<16x256xf32> to vector<1x16x256xf32>
    %cst_4 = arith.constant dense<0.000000e+00> : vector<1xf32>
    %12 = vector.multi_reduction <add>, %11, %cst_4 [1, 2] : vector<1x16x256xf32> to vector<1xf32>
    %13 = vector.shape_cast %12 : vector<1xf32> to vector<1x1x1xf32>
    %14 = vector.extract %13[0, 0, 0] : f32 from vector<1x1x1xf32>
    %c0_5 = arith.constant 0 : index
    %c0_6 = arith.constant 0 : index
    %15 = memref.load %arg3[%c0_5, %c0_6] : memref<1x1xf32, #tpu.memory_space<smem>>
    memref.store %14, %arg3[%c0_5, %c0_6] : memref<1x1xf32, #tpu.memory_space<smem>>
    return
  }
  func.func @transform_0(%arg0: i32) -> (i32, i32) {
    %c0_i32 = arith.constant 0 : i32
    %c0_i32_0 = arith.constant 0 : i32
    return %arg0, %c0_i32 : i32, i32
  }
  func.func @transform_1(%arg0: i32) -> (i32, i32) {
    %c0_i32 = arith.constant 0 : i32
    %c0_i32_0 = arith.constant 0 : i32
    return %arg0, %c0_i32 : i32, i32
  }
  func.func @transform_2(%arg0: i32) -> (i32, i32) {
    %c0_i32 = arith.constant 0 : i32
    %c0_i32_0 = arith.constant 0 : i32
    return %arg0, %c0_i32 : i32, i32
  }
}

</mosaic_0001>

<bundles_post_ra>
// kernel: tpu_custom_call.1
= control target key start
LH: loop header
LB: loop body
LE: loop exit
PB: predicated region body
PF: predicated region fallthrough
CT: control target
= control target key end

     0   :  { %7 = vsyncpa [#allocation3], 0  ;;  %s275_s0 = inlined_call_operand.hbm [shape: f32[16,256], index: 0, kind: input, shape index: {}]   ;;  %s276_s1 = inlined_call_operand.hbm [shape: f32[16,256], index: 1, kind: input, shape index: {}]   ;;  %s277_s2 = inlined_call_operand.hbm [shape: f32[1,1], index: 2, kind: output, shape index: {}]  }
   0x1   :  { %8 = vsyncpa [#allocation6], 0 }
   0x2   :  { %9 = vsyncpa [#allocation4], 0  ;;  %s218_s9 = smov [#allocation2]  }
   0x3   :  { %s15_s10 = sshll.u32 %s218_s9, 4  ;;  %s16_s10 = int_to_ptr.vmem [resolvable:$true] %s15_s10 }
   0x4   :  { %s172_s11 = scalar_lea.vmem %s16_s10, 512  ;;  %p177_p1 = scmp.lt.s32.totalorder %s16_s10, %s16_s10 }
   0x5   :  { %p173_p0 = scmp.ne.s32.totalorder %s16_s10, %s172_s11  ;;  %p178_p2 = scmp.lt.s32.totalorder %s172_s11, %s172_s11 }
   0x7   :  { %p179_p3 = por %p178_p2, %p177_p1 }
   0x9   :  { %p180_p4 = pnand %p179_p3, %p173_p0 }
   0xb   :  { %183 = shalt.err (!%p180_p4)
}
   0xc   :  { %s219_s12 = smov 256   ;;  %s220_s13 = smov 16  }
   0xd   :  { %21 = dma.hbm_to_vmem [thread:$0]  %s275_s0, 512, %s16_s10, [#allocation3], %s219_s12, %s219_s12, %s220_s13  }
   0xe   :  { %s221_s16 = smov [#allocation5]  }
   0xf   :  { %s27_s17 = sshll.u32 %s221_s16, 4  ;;  %s28_s17 = int_to_ptr.vmem [resolvable:$true] %s27_s17 }
  0x10   :  { %s192_s18 = scalar_lea.vmem %s28_s17, 512  ;;  %p197_p6 = scmp.lt.s32.totalorder %s28_s17, %s28_s17 }
  0x11   :  { %p193_p5 = scmp.ne.s32.totalorder %s28_s17, %s192_s18  ;;  %p198_p7 = scmp.lt.s32.totalorder %s192_s18, %s192_s18 }
  0x13   :  { %p199_p8 = por %p198_p7, %p197_p6 }
  0x15   :  { %p200_p9 = pnand %p199_p8, %p193_p5 }
  0x17   :  { %203 = shalt.err (!%p200_p9)
}
  0x18   :  { %33 = dma.hbm_to_vmem [thread:$0]  %s276_s1, 512, %s28_s17, [#allocation6], %s219_s12, %s219_s12, %s220_s13  }
  0x19   :  { %212 = dma.done.wait [#allocation3], 512  }
  0x1a   :  { %213 = vsyncadd [#allocation3], 4294966784 }
  0x1b   :  { %214 = dma.done.wait [#allocation6], 512  }
  0x1c   :  { %215 = vsyncadd [#allocation6], 4294966784  ;;  %v40_v0 = vld [vmem:[#allocation2] sm:$0xff]  ;;  %v41_v1 = vld [vmem:[#allocation2 + $0x8] sm:$0xff]  ;;  %s222_s1 = smov [#allocation7]  }
  0x1d   :  { %v42_v2 = vld [vmem:[#allocation2 + $0x10] sm:$0xff]  ;;  %v43_v3 = vld [vmem:[#allocation2 + $0x18] sm:$0xff]  ;;  %v44_v4 = vld [vmem:[#allocation5] sm:$0xff] }
  0x1e   :  { %v45_v5 = vld [vmem:[#allocation5 + $0x8] sm:$0xff]  ;;  %v46_v6 = vld [vmem:[#allocation5 + $0x10] sm:$0xff]  ;;  %v47_v7 = vld [vmem:[#allocation5 + $0x18] sm:$0xff]  ;;  %v244_v8 = vsub.f32 %v40_v0, %v44_v4 }
  0x1f   :  { %v246_v9 = vsub.f32 %v41_v1, %v45_v5  ;;  %v248_v10 = vsub.f32 %v42_v2, %v46_v6  ;;  %v250_v11 = vsub.f32 %v43_v3, %v47_v7 }
  0x20   :  { %v56_v12 = vand.u32 2147483647, %v244_v8  ;;  %v52_v45 = vmin.f32 %v244_v8, 0.0 }
  0x21   :  { %v57_v13 = vand.u32 2147483647, %v246_v9  ;;  %v58_v14 = vand.u32 2147483647, %v248_v10  ;;  %v59_v15 = vand.u32 2147483647, %v250_v11 }
  0x22   :  { %v60_v16 = vsub.f32 0.0, %v56_v12  ;;  %v53_v50 = vmin.f32 %v246_v9, 0.0  ;;  %v54_v55 = vmin.f32 %v248_v10, 0.0  ;;  %v55_v61 = vmin.f32 %v250_v11, 0.0 }
  0x23   :  { %v61_v17 = vsub.f32 0.0, %v57_v13  ;;  %v62_v18 = vsub.f32 0.0, %v58_v14  ;;  %v63_v19 = vsub.f32 0.0, %v59_v15 }
  0x24   :  { %v64_v20 = vmul.f32 1.442695, %v60_v16 }
  0x25   :  { %v66_v21 = vmul.f32 1.442695, %v61_v17  ;;  %v68_v22 = vmul.f32 1.442695, %v62_v18  ;;  %v70_v23 = vmul.f32 1.442695, %v63_v19 }
  0x26   :  { %148 = vpow2.f32 %v64_v20 }
  0x27   :  { %150 = vpow2.f32 %v66_v21 }
  0x28   :  { %152 = vpow2.f32 %v68_v22 }
  0x29   :  { %154 = vpow2.f32 %v70_v23 }
  0x33   :  { %v149_v24 = vpop.eup %148 }
  0x34   :  { %v151_v25 = vpop.eup %150  ;;  %v72_v26 = vadd.f32 1.0, %v149_v24  ;;  %v75_v32 = vmul.f32 -0.5, %v149_v24  ;;  %v78_v37 = vand.u32 2147483647, %v149_v24 }
  0x35   :  { %v153_v27 = vpop.eup %152  ;;  %v81_v28 = vadd.f32 1.0, %v151_v25  ;;  %v84_v33 = vmul.f32 -0.5, %v151_v25  ;;  %v87_v39 = vand.u32 2147483647, %v151_v25 }
  0x36   :  { %v155_v29 = vpop.eup %154  ;;  %156 = vlog2.f32 %v72_v26  ;;  %v90_v30 = vadd.f32 1.0, %v153_v27  ;;  %v93_v34 = vmul.f32 -0.5, %v153_v27  ;;  %v76_v35 = vadd.f32 1.0, %v75_v32 }
  0x37   :  { %158 = vlog2.f32 %v81_v28  ;;  %v99_v31 = vadd.f32 1.0, %v155_v29  ;;  %v102_v36 = vmul.f32 -0.5, %v155_v29  ;;  %v85_v38 = vadd.f32 1.0, %v84_v33 }
  0x38   :  { %160 = vlog2.f32 %v90_v30  ;;  %v94_v40 = vadd.f32 1.0, %v93_v34  ;;  %v96_v41 = vand.u32 2147483647, %v153_v27  ;;  %v77_v42 = vmul.f32 %v149_v24, %v76_v35 }
  0x39   :  { %162 = vlog2.f32 %v99_v31  ;;  %v103_v43 = vadd.f32 1.0, %v102_v36  ;;  %vm257_vm0 = vcmp.lt.f32.partialorder %v78_v37, 0.0004427343  ;;  %v86_v47 = vmul.f32 %v151_v25, %v85_v38 }
  0x3a   :  { %v105_v48 = vand.u32 2147483647, %v155_v29  ;;  %vm262_vm1 = vcmp.lt.f32.partialorder %v87_v39, 0.0004427343  ;;  %v95_v53 = vmul.f32 %v153_v27, %v94_v40  ;;  %vm97_vm2 = vcmp.lt.f32.partialorder %v96_v41, 0.0004427343 }
  0x3b   :  { %v104_v59 = vmul.f32 %v155_v29, %v103_v43 }
  0x3c   :  { %vm106_vm3 = vcmp.lt.f32.partialorder %v105_v48, 0.0004427343 }
  0x43   :  { %v157_v44 = vpop.eup %156 }
  0x44   :  { %v159_v49 = vpop.eup %158  ;;  %v74_v51 = vmul.f32 0.6931472, %v157_v44 }
  0x45   :  { %v161_v54 = vpop.eup %160  ;;  %v83_v56 = vmul.f32 0.6931472, %v159_v49 }
  0x46   :  { %v80_v57 = vsel %vm257_vm0, %v77_v42, %v74_v51  ;;  %v92_v58 = vmul.f32 0.6931472, %v161_v54  ;;  %v163_v60 = vpop.eup %162 }
  0x47   :  { %v89_v62 = vsel %vm262_vm1, %v86_v47, %v83_v56  ;;  %v108_v63 = vsub.f32 %v52_v45, %v80_v57  ;;  %v101_v1 = vmul.f32 0.6931472, %v163_v60 }
  0x48   :  { %v98_v0 = vsel %vm97_vm2, %v95_v53, %v92_v58  ;;  %v109_v2 = vsub.f32 %v53_v50, %v89_v62 }
  0x49   :  { %v110_v3 = vsub.f32 %v54_v55, %v98_v0  ;;  %v107_v4 = vsel %vm106_vm3, %v104_v59, %v101_v1 }
  0x4a   :  { %v112_v5 = vadd.f32 %v109_v2, %v108_v63  ;;  %v111_v6 = vsub.f32 %v55_v61, %v107_v4 }
  0x4c   :  { %v113_v7 = vadd.f32 %v112_v5, %v110_v3 }
  0x4e   :  { %v114_v8 = vadd.f32 %v113_v7, %v111_v6 }
  0x50   :  { %115 = vadd.xlane.f32.xlu0 %v114_v8 }
  0xd9   :  { %v116_v9 = vpop.xlane.xlu0 %115 }
  0xda   :  { %v117_v10 = vrot.slane %v116_v9, 4 }
  0xdc   :  { %v118_v12 = vadd.f32 %v117_v10, %v116_v9 }
  0xde   :  { %v119_v13 = vrot.slane %v118_v12, 2 }
  0xe0   :  { %v120_v11 = vadd.f32 %v119_v13, %v118_v12 }
  0xe2   :  { %v121_v14 = vrot.slane %v120_v11, 1 }
  0xe4   :  { %v122_v15 = vadd.f32 %v121_v14, %v120_v11 }
  0xe6   :  { %141 = vpush %v122_v15 }
 0x117   :  { %s142_s0 = spop %141 }
 0x118   :  { %125 = sst [smem:[#allocation7]] %s142_s0 }
 0x119   :  { %133 = dma.smem_to_hbm %s222_s1, 16, %s277_s2, [#allocation4]  }
 0x11a   :  { %216 = dma.done.wait [#allocation4], 16  }
 0x11b   :  { %217 = vsyncadd [#allocation4], 4294967280 }
 0x11c   :  { %137 = sfence }
 0x11d   :  { %138 = vsyncpa [#allocation3], 1 }
 0x11e   :  { %139 = vsyncpa [#allocation6], 1 }
 0x11f   :  { %140 = vsyncpa [#allocation4], 1 }

</bundles_post_ra>
